<compile_context>
chip_gen: v7x
topology: tpu7x:2x2x1
jax: 0.10.0
libtpu: 0.0.40
codegen_flags: <defaults>
</compile_context>

<pallas_src>
import jax
import jax.numpy as jnp
from jax.experimental import pallas as pl
from jax.experimental.pallas import tpu as pltpu


_IN_FEATURES = 3
_HIDDEN = 16
_LANES = 128
_MAX_ROWS_PER_TILE = 512     # 512 * 128 = 65536 batch elements per grid step
_TARGET_GRID_STEPS = 8       # keep pipeline depth / megacore sharding for big batches
_TEMP_SLABS_F32 = 24         # generous bound on compiler temporaries (z, hj, splats, spills)


def _round_up(n, m):
    return ((n + m - 1) // m) * m


def _vmem_capacity_bytes():
    # Per-generation VMEM (v5e/v6e: 128 MiB, v7x: 64 MiB per TensorCore).
    # Fall back to the smallest (v7x) if the query is unavailable.
    try:
        return int(pltpu.get_tpu_info().vmem_capacity_bytes)
    except Exception:
        return 64 * 1024 * 1024


def _mlp_kernel(x_ref, w1_ref, b1_ref, w2_ref, b2_ref, o_ref):
    # x_ref : (3, rows, 128) VMEM  -- batch element = row * 128 + lane
    # w1_ref: (16, 3) SMEM, b1_ref: (16,) SMEM, w2_ref: (16,) SMEM, b2_ref: (1,) SMEM
    # o_ref : (rows, 128) VMEM
    x0 = x_ref[0].astype(jnp.float32)
    x1 = x_ref[1].astype(jnp.float32)
    x2 = x_ref[2].astype(jnp.float32)

    # Fully fused 3 -> 16 -> 1 chain on the VPU (scalar-broadcast MACs).  K=3 / N=1
    # would waste >97% of the MXU; fusing over the hidden dim means the (16, tile)
    # activation is never materialized in VMEM.
    z = jnp.zeros_like(x0)
    for j in range(_HIDDEN):                       # static unroll (16 iterations)
        hj = (w1_ref[j, 0] * x0
              + w1_ref[j, 1] * x1
              + w1_ref[j, 2] * x2
              + b1_ref[j])
        z = z + w2_ref[j] * jnp.maximum(hj, 0.0)   # ReLU + fc2 contribution
    z = z + b2_ref[0]

    # sigmoid(z) = 0.5 * tanh(0.5 z) + 0.5  -> one exact EUP op (no approx reciprocal).
    o_ref[...] = (0.5 * jnp.tanh(0.5 * z) + 0.5).astype(o_ref.dtype)


def mlp_forward_feature_major(xT, w1, b1, w2, b2, *, out_dtype=None):
    """Bandwidth-optimal entry: xT is (3, B) feature-major (no transpose pass over x).

    Weights use the PyTorch nn.Linear layout: w1 (16, 3), b1 (16,), w2 (1, 16), b2 (1,).
    Returns (B, 1).
    """
    assert xT.ndim == 2 and xT.shape[0] == _IN_FEATURES
    B = xT.shape[1]
    if out_dtype is None:
        out_dtype = xT.dtype

    # Pad the batch only up to a lane multiple (128).  Ragged tile tails are handled
    # by Pallas' masked last block instead of padding up to the tile size.
    bp = _round_up(max(B, 1), _LANES)
    if bp != B:
        xT = jnp.pad(xT, ((0, 0), (0, bp - B)))
    rows_total = bp // _LANES
    x3 = xT.reshape(_IN_FEATURES, rows_total, _LANES)   # contiguity-preserving (free)

    in_item = jnp.dtype(xT.dtype).itemsize
    out_item = jnp.dtype(out_dtype).itemsize

    # --- tile selection with honest VMEM accounting ---------------------------------
    # Per 128-element strip (one (1, 128) row of the dense slab):
    #   x block (double-buffered)  : 2 * 3 * 128 * in_item
    #   out block (double-buffered): 2 * 128 * out_item
    #   compiler temporaries (f32) : _TEMP_SLABS_F32 * 128 * 4
    bytes_per_strip = (2 * _IN_FEATURES * _LANES * in_item
                       + 2 * _LANES * out_item
                       + _TEMP_SLABS_F32 * _LANES * 4)
    vmem_capacity = _vmem_capacity_bytes()
    vmem_budget = vmem_capacity // 2                     # leave half for Mosaic/runtime
    cap_rows = max(8, vmem_budget // bytes_per_strip)
    cap_rows = min(cap_rows, _MAX_ROWS_PER_TILE)

    if rows_total <= 8:
        rows_tile = rows_total                           # tiny batch: one full block
    else:
        rows_tile = _round_up(pl.cdiv(rows_total, _TARGET_GRID_STEPS), 8)
        rows_tile = max(8, min(rows_tile, cap_rows))
    grid = (pl.cdiv(rows_total, rows_tile),)

    tile_elems = rows_tile * _LANES
    vmem_bytes = int(min(
        2 * _IN_FEATURES * tile_elems * in_item          # double-buffered x blocks
        + 2 * tile_elems * out_item                      # double-buffered out blocks
        + _TEMP_SLABS_F32 * tile_elems * 4               # compute-chain temporaries
        + (8 << 20),                                     # headroom
        int(0.9 * vmem_capacity),
    ))

    w1f = w1.astype(jnp.float32)                         # (16, 3) -> SMEM scalars
    b1f = b1.reshape(_HIDDEN).astype(jnp.float32)        # (16,)
    w2f = w2.reshape(_HIDDEN).astype(jnp.float32)        # (16,)
    b2f = b2.reshape(1).astype(jnp.float32)              # (1,)

    # Weights/biases are resident in SMEM (copied once; no per-step DMA, no
    # double-buffering waste).
    smem_spec = pl.BlockSpec(memory_space=pltpu.MemorySpace.SMEM)

    out3 = pl.pallas_call(
        _mlp_kernel,
        out_shape=jax.ShapeDtypeStruct((rows_total, _LANES), out_dtype),
        grid=grid,
        in_specs=[
            pl.BlockSpec((_IN_FEATURES, rows_tile, _LANES), lambda i: (0, i, 0)),
            smem_spec, smem_spec, smem_spec, smem_spec,
        ],
        out_specs=pl.BlockSpec((rows_tile, _LANES), lambda i: (i, 0)),
        compiler_params=pltpu.CompilerParams(
            dimension_semantics=("parallel",),           # megacore-shard the batch axis
            vmem_limit_bytes=vmem_bytes,
        ),
        cost_estimate=pl.CostEstimate(
            flops=150 * bp,                              # ~96 fc1 + 16 relu + 32 fc2 + misc
            transcendentals=bp,                          # one tanh per element
            bytes_accessed=_IN_FEATURES * bp * in_item + bp * out_item
                           + 4 * (_HIDDEN * _IN_FEATURES + 2 * _HIDDEN + 1),
        ),
    )(x3, w1f, b1f, w2f, b2f)

    return out3.reshape(bp)[:B].reshape(B, 1)


def mlp_forward(x, w1, b1, w2, b2, *, out_dtype=None):
    """PyTorch-contract entry: x is (B, 3), returns (B, 1).

    Matching the (B, 3) layout needs one transpose pass over x in the wrapper;
    callers that can supply feature-major (3, B) data should call
    mlp_forward_feature_major directly and skip that pass.
    """
    assert x.ndim == 2 and x.shape[1] == _IN_FEATURES
    return mlp_forward_feature_major(x.T, w1, b1, w2, b2, out_dtype=out_dtype)


def init_params(key):
    # PyTorch nn.Linear layout: weight (out_features, in_features),
    # init uniform(-1/sqrt(fan_in), +1/sqrt(fan_in)).
    k1, k2, k3, k4 = jax.random.split(key, 4)
    bound1 = 1.0 / jnp.sqrt(3.0)
    bound2 = 1.0 / jnp.sqrt(16.0)
    w1 = jax.random.uniform(k1, (16, 3), jnp.float32, -bound1, bound1)
    b1 = jax.random.uniform(k2, (16,), jnp.float32, -bound1, bound1)
    w2 = jax.random.uniform(k3, (1, 16), jnp.float32, -bound2, bound2)
    b2 = jax.random.uniform(k4, (1,), jnp.float32, -bound2, bound2)
    return w1, b1, w2, b2


def _reference(x, w1, b1, w2, b2):
    # PyTorch semantics: sigmoid(relu(x @ W1.T + b1) @ W2.T + b2)
    return jax.nn.sigmoid(jnp.maximum(x @ w1.T + b1, 0.0) @ w2.T + b2)


if __name__ == "__main__":
    key = jax.random.PRNGKey(0)
    k_x, k_x2, k_p = jax.random.split(key, 3)
    w1, b1, w2, b2 = init_params(k_p)

    # Small-shape check (PyTorch contract: (B, 3) -> (B, 1)).
    B = 8
    x = jax.random.normal(k_x, (B, 3), dtype=jnp.float32)
    out = jax.block_until_ready(mlp_forward(x, w1, b1, w2, b2))
    ref = _reference(x, w1, b1, w2, b2)
    assert out.shape == (B, 1)
    assert jnp.allclose(out, ref, atol=1e-4, rtol=0.0), (out, ref)

    # Second check exercising the multi-step grid and the masked ragged tail
    # (B not a multiple of 128, rows not a multiple of the row tile).
    B2 = 4200
    x2 = jax.random.normal(k_x2, (B2, 3), dtype=jnp.float32)
    out2 = jax.block_until_ready(mlp_forward(x2, w1, b1, w2, b2))
    ref2 = _reference(x2, w1, b1, w2, b2)
    assert out2.shape == (B2, 1)
    assert jnp.allclose(out2, ref2, atol=1e-4, rtol=0.0)

    print("KERNEL_OK")
</pallas_src>

<mosaic_0001>
module attributes {stable_mosaic.version = 11 : i64} {
  func.func @_mlp_kernel(%arg0: i32, %arg1: memref<3x1x128xf32, #tpu.memory_space<vmem>>, %arg2: memref<16x3xf32, #tpu.memory_space<smem>>, %arg3: memref<16xf32, #tpu.memory_space<smem>>, %arg4: memref<16xf32, #tpu.memory_space<smem>>, %arg5: memref<1xf32, #tpu.memory_space<smem>>, %arg6: memref<1x128xf32, #tpu.memory_space<vmem>>) attributes {dimension_semantics = [#tpu.dimension_semantics<parallel>], iteration_bounds = array<i64: 1>, scalar_prefetch = 0 : i64, scratch_operands = 0 : i64, tpu.core_type = #tpu.core_type<tc>, window_params = [{transform_indices = @transform_0, window_bounds = array<i64: 3, 1, 128>}, {transform_indices = @transform_1, window_bounds = array<i64: 16, 3>}, {transform_indices = @transform_2, window_bounds = array<i64: 16>}, {transform_indices = @transform_3, window_bounds = array<i64: 16>}, {transform_indices = @transform_4, window_bounds = array<i64: 1>}, {transform_indices = @transform_5, window_bounds = array<i64: 1, 128>}]} {
    %c0 = arith.constant 0 : index
    %c0_0 = arith.constant 0 : index
    %c0_1 = arith.constant 0 : index
    %0 = vector.load %arg1[%c0, %c0_0, %c0_1] : memref<3x1x128xf32, #tpu.memory_space<vmem>>, vector<1x1x128xf32>
    %1 = vector.shape_cast %0 : vector<1x1x128xf32> to vector<1x128xf32>
    %c1 = arith.constant 1 : index
    %c0_2 = arith.constant 0 : index
    %c0_3 = arith.constant 0 : index
    %2 = vector.load %arg1[%c1, %c0_2, %c0_3] : memref<3x1x128xf32, #tpu.memory_space<vmem>>, vector<1x1x128xf32>
    %3 = vector.shape_cast %2 : vector<1x1x128xf32> to vector<1x128xf32>
    %c2 = arith.constant 2 : index
    %c0_4 = arith.constant 0 : index
    %c0_5 = arith.constant 0 : index
    %4 = vector.load %arg1[%c2, %c0_4, %c0_5] : memref<3x1x128xf32, #tpu.memory_space<vmem>>, vector<1x1x128xf32>
    %5 = vector.shape_cast %4 : vector<1x1x128xf32> to vector<1x128xf32>
    %cst = arith.constant 0.000000e+00 : f32
    %6 = vector.broadcast %cst : f32 to vector<1x128xf32>
    %c0_6 = arith.constant 0 : index
    %c0_7 = arith.constant 0 : index
    %7 = memref.load %arg2[%c0_6, %c0_7] : memref<16x3xf32, #tpu.memory_space<smem>>
    %8 = vector.broadcast %7 : f32 to vector<1x128xf32>
    %9 = arith.mulf %8, %1 : vector<1x128xf32>
    %c0_8 = arith.constant 0 : index
    %c1_9 = arith.constant 1 : index
    %10 = memref.load %arg2[%c0_8, %c1_9] : memref<16x3xf32, #tpu.memory_space<smem>>
    %11 = vector.broadcast %10 : f32 to vector<1x128xf32>
    %12 = arith.mulf %11, %3 : vector<1x128xf32>
    %13 = arith.addf %9, %12 : vector<1x128xf32>
    %c0_10 = arith.constant 0 : index
    %c2_11 = arith.constant 2 : index
    %14 = memref.load %arg2[%c0_10, %c2_11] : memref<16x3xf32, #tpu.memory_space<smem>>
    %15 = vector.broadcast %14 : f32 to vector<1x128xf32>
    %16 = arith.mulf %15, %5 : vector<1x128xf32>
    %17 = arith.addf %13, %16 : vector<1x128xf32>
    %c0_12 = arith.constant 0 : index
    %18 = memref.load %arg3[%c0_12] : memref<16xf32, #tpu.memory_space<smem>>
    %19 = vector.broadcast %18 : f32 to vector<1x128xf32>
    %20 = arith.addf %17, %19 : vector<1x128xf32>
    %c0_13 = arith.constant 0 : index
    %21 = memref.load %arg4[%c0_13] : memref<16xf32, #tpu.memory_space<smem>>
    %cst_14 = arith.constant 0.000000e+00 : f32
    %22 = vector.broadcast %cst_14 : f32 to vector<1x128xf32>
    %23 = arith.maximumf %20, %22 : vector<1x128xf32>
    %24 = vector.broadcast %21 : f32 to vector<1x128xf32>
    %25 = arith.mulf %24, %23 : vector<1x128xf32>
    %26 = arith.addf %6, %25 : vector<1x128xf32>
    %c1_15 = arith.constant 1 : index
    %c0_16 = arith.constant 0 : index
    %27 = memref.load %arg2[%c1_15, %c0_16] : memref<16x3xf32, #tpu.memory_space<smem>>
    %28 = vector.broadcast %27 : f32 to vector<1x128xf32>
    %29 = arith.mulf %28, %1 : vector<1x128xf32>
    %c1_17 = arith.constant 1 : index
    %c1_18 = arith.constant 1 : index
    %30 = memref.load %arg2[%c1_17, %c1_18] : memref<16x3xf32, #tpu.memory_space<smem>>
    %31 = vector.broadcast %30 : f32 to vector<1x128xf32>
    %32 = arith.mulf %31, %3 : vector<1x128xf32>
    %33 = arith.addf %29, %32 : vector<1x128xf32>
    %c1_19 = arith.constant 1 : index
    %c2_20 = arith.constant 2 : index
    %34 = memref.load %arg2[%c1_19, %c2_20] : memref<16x3xf32, #tpu.memory_space<smem>>
    %35 = vector.broadcast %34 : f32 to vector<1x128xf32>
    %36 = arith.mulf %35, %5 : vector<1x128xf32>
    %37 = arith.addf %33, %36 : vector<1x128xf32>
    %c1_21 = arith.constant 1 : index
    %38 = memref.load %arg3[%c1_21] : memref<16xf32, #tpu.memory_space<smem>>
    %39 = vector.broadcast %38 : f32 to vector<1x128xf32>
    %40 = arith.addf %37, %39 : vector<1x128xf32>
    %c1_22 = arith.constant 1 : index
    %41 = memref.load %arg4[%c1_22] : memref<16xf32, #tpu.memory_space<smem>>
    %cst_23 = arith.constant 0.000000e+00 : f32
    %42 = vector.broadcast %cst_23 : f32 to vector<1x128xf32>
    %43 = arith.maximumf %40, %42 : vector<1x128xf32>
    %44 = vector.broadcast %41 : f32 to vector<1x128xf32>
    %45 = arith.mulf %44, %43 : vector<1x128xf32>
    %46 = arith.addf %26, %45 : vector<1x128xf32>
    %c2_24 = arith.constant 2 : index
    %c0_25 = arith.constant 0 : index
    %47 = memref.load %arg2[%c2_24, %c0_25] : memref<16x3xf32, #tpu.memory_space<smem>>
    %48 = vector.broadcast %47 : f32 to vector<1x128xf32>
    %49 = arith.mulf %48, %1 : vector<1x128xf32>
    %c2_26 = arith.constant 2 : index
    %c1_27 = arith.constant 1 : index
    %50 = memref.load %arg2[%c2_26, %c1_27] : memref<16x3xf32, #tpu.memory_space<smem>>
    %51 = vector.broadcast %50 : f32 to vector<1x128xf32>
    %52 = arith.mulf %51, %3 : vector<1x128xf32>
    %53 = arith.addf %49, %52 : vector<1x128xf32>
    %c2_28 = arith.constant 2 : index
    %c2_29 = arith.constant 2 : index
    %54 = memref.load %arg2[%c2_28, %c2_29] : memref<16x3xf32, #tpu.memory_space<smem>>
    %55 = vector.broadcast %54 : f32 to vector<1x128xf32>
    %56 = arith.mulf %55, %5 : vector<1x128xf32>
    %57 = arith.addf %53, %56 : vector<1x128xf32>
    %c2_30 = arith.constant 2 : index
    %58 = memref.load %arg3[%c2_30] : memref<16xf32, #tpu.memory_space<smem>>
    %59 = vector.broadcast %58 : f32 to vector<1x128xf32>
    %60 = arith.addf %57, %59 : vector<1x128xf32>
    %c2_31 = arith.constant 2 : index
    %61 = memref.load %arg4[%c2_31] : memref<16xf32, #tpu.memory_space<smem>>
    %cst_32 = arith.constant 0.000000e+00 : f32
    %62 = vector.broadcast %cst_32 : f32 to vector<1x128xf32>
    %63 = arith.maximumf %60, %62 : vector<1x128xf32>
    %64 = vector.broadcast %61 : f32 to vector<1x128xf32>
    %65 = arith.mulf %64, %63 : vector<1x128xf32>
    %66 = arith.addf %46, %65 : vector<1x128xf32>
    %c3 = arith.constant 3 : index
    %c0_33 = arith.constant 0 : index
    %67 = memref.load %arg2[%c3, %c0_33] : memref<16x3xf32, #tpu.memory_space<smem>>
    %68 = vector.broadcast %67 : f32 to vector<1x128xf32>
    %69 = arith.mulf %68, %1 : vector<1x128xf32>
    %c3_34 = arith.constant 3 : index
    %c1_35 = arith.constant 1 : index
    %70 = memref.load %arg2[%c3_34, %c1_35] : memref<16x3xf32, #tpu.memory_space<smem>>
    %71 = vector.broadcast %70 : f32 to vector<1x128xf32>
    %72 = arith.mulf %71, %3 : vector<1x128xf32>
    %73 = arith.addf %69, %72 : vector<1x128xf32>
    %c3_36 = arith.constant 3 : index
    %c2_37 = arith.constant 2 : index
    %74 = memref.load %arg2[%c3_36, %c2_37] : memref<16x3xf32, #tpu.memory_space<smem>>
    %75 = vector.broadcast %74 : f32 to vector<1x128xf32>
    %76 = arith.mulf %75, %5 : vector<1x128xf32>
    %77 = arith.addf %73, %76 : vector<1x128xf32>
    %c3_38 = arith.constant 3 : index
    %78 = memref.load %arg3[%c3_38] : memref<16xf32, #tpu.memory_space<smem>>
    %79 = vector.broadcast %78 : f32 to vector<1x128xf32>
    %80 = arith.addf %77, %79 : vector<1x128xf32>
    %c3_39 = arith.constant 3 : index
    %81 = memref.load %arg4[%c3_39] : memref<16xf32, #tpu.memory_space<smem>>
    %cst_40 = arith.constant 0.000000e+00 : f32
    %82 = vector.broadcast %cst_40 : f32 to vector<1x128xf32>
    %83 = arith.maximumf %80, %82 : vector<1x128xf32>
    %84 = vector.broadcast %81 : f32 to vector<1x128xf32>
    %85 = arith.mulf %84, %83 : vector<1x128xf32>
    %86 = arith.addf %66, %85 : vector<1x128xf32>
    %c4 = arith.constant 4 : index
    %c0_41 = arith.constant 0 : index
    %87 = memref.load %arg2[%c4, %c0_41] : memref<16x3xf32, #tpu.memory_space<smem>>
    %88 = vector.broadcast %87 : f32 to vector<1x128xf32>
    %89 = arith.mulf %88, %1 : vector<1x128xf32>
    %c4_42 = arith.constant 4 : index
    %c1_43 = arith.constant 1 : index
    %90 = memref.load %arg2[%c4_42, %c1_43] : memref<16x3xf32, #tpu.memory_space<smem>>
    %91 = vector.broadcast %90 : f32 to vector<1x128xf32>
    %92 = arith.mulf %91, %3 : vector<1x128xf32>
    %93 = arith.addf %89, %92 : vector<1x128xf32>
    %c4_44 = arith.constant 4 : index
    %c2_45 = arith.constant 2 : index
    %94 = memref.load %arg2[%c4_44, %c2_45] : memref<16x3xf32, #tpu.memory_space<smem>>
    %95 = vector.broadcast %94 : f32 to vector<1x128xf32>
    %96 = arith.mulf %95, %5 : vector<1x128xf32>
    %97 = arith.addf %93, %96 : vector<1x128xf32>
    %c4_46 = arith.constant 4 : index
    %98 = memref.load %arg3[%c4_46] : memref<16xf32, #tpu.memory_space<smem>>
    %99 = vector.broadcast %98 : f32 to vector<1x128xf32>
    %100 = arith.addf %97, %99 : vector<1x128xf32>
    %c4_47 = arith.constant 4 : index
    %101 = memref.load %arg4[%c4_47] : memref<16xf32, #tpu.memory_space<smem>>
    %cst_48 = arith.constant 0.000000e+00 : f32
    %102 = vector.broadcast %cst_48 : f32 to vector<1x128xf32>
    %103 = arith.maximumf %100, %102 : vector<1x128xf32>
    %104 = vector.broadcast %101 : f32 to vector<1x128xf32>
    %105 = arith.mulf %104, %103 : vector<1x128xf32>
    %106 = arith.addf %86, %105 : vector<1x128xf32>
    %c5 = arith.constant 5 : index
    %c0_49 = arith.constant 0 : index
    %107 = memref.load %arg2[%c5, %c0_49] : memref<16x3xf32, #tpu.memory_space<smem>>
    %108 = vector.broadcast %107 : f32 to vector<1x128xf32>
    %109 = arith.mulf %108, %1 : vector<1x128xf32>
    %c5_50 = arith.constant 5 : index
    %c1_51 = arith.constant 1 : index
    %110 = memref.load %arg2[%c5_50, %c1_51] : memref<16x3xf32, #tpu.memory_space<smem>>
    %111 = vector.broadcast %110 : f32 to vector<1x128xf32>
    %112 = arith.mulf %111, %3 : vector<1x128xf32>
    %113 = arith.addf %109, %112 : vector<1x128xf32>
    %c5_52 = arith.constant 5 : index
    %c2_53 = arith.constant 2 : index
    %114 = memref.load %arg2[%c5_52, %c2_53] : memref<16x3xf32, #tpu.memory_space<smem>>
    %115 = vector.broadcast %114 : f32 to vector<1x128xf32>
    %116 = arith.mulf %115, %5 : vector<1x128xf32>
    %117 = arith.addf %113, %116 : vector<1x128xf32>
    %c5_54 = arith.constant 5 : index
    %118 = memref.load %arg3[%c5_54] : memref<16xf32, #tpu.memory_space<smem>>
    %119 = vector.broadcast %118 : f32 to vector<1x128xf32>
    %120 = arith.addf %117, %119 : vector<1x128xf32>
    %c5_55 = arith.constant 5 : index
    %121 = memref.load %arg4[%c5_55] : memref<16xf32, #tpu.memory_space<smem>>
    %cst_56 = arith.constant 0.000000e+00 : f32
    %122 = vector.broadcast %cst_56 : f32 to vector<1x128xf32>
    %123 = arith.maximumf %120, %122 : vector<1x128xf32>
    %124 = vector.broadcast %121 : f32 to vector<1x128xf32>
    %125 = arith.mulf %124, %123 : vector<1x128xf32>
    %126 = arith.addf %106, %125 : vector<1x128xf32>
    %c6 = arith.constant 6 : index
    %c0_57 = arith.constant 0 : index
    %127 = memref.load %arg2[%c6, %c0_57] : memref<16x3xf32, #tpu.memory_space<smem>>
    %128 = vector.broadcast %127 : f32 to vector<1x128xf32>
    %129 = arith.mulf %128, %1 : vector<1x128xf32>
    %c6_58 = arith.constant 6 : index
    %c1_59 = arith.constant 1 : index
    %130 = memref.load %arg2[%c6_58, %c1_59] : memref<16x3xf32, #tpu.memory_space<smem>>
    %131 = vector.broadcast %130 : f32 to vector<1x128xf32>
    %132 = arith.mulf %131, %3 : vector<1x128xf32>
    %133 = arith.addf %129, %132 : vector<1x128xf32>
    %c6_60 = arith.constant 6 : index
    %c2_61 = arith.constant 2 : index
    %134 = memref.load %arg2[%c6_60, %c2_61] : memref<16x3xf32, #tpu.memory_space<smem>>
    %135 = vector.broadcast %134 : f32 to vector<1x128xf32>
    %136 = arith.mulf %135, %5 : vector<1x128xf32>
    %137 = arith.addf %133, %136 : vector<1x128xf32>
    %c6_62 = arith.constant 6 : index
    %138 = memref.load %arg3[%c6_62] : memref<16xf32, #tpu.memory_space<smem>>
    %139 = vector.broadcast %138 : f32 to vector<1x128xf32>
    %140 = arith.addf %137, %139 : vector<1x128xf32>
    %c6_63 = arith.constant 6 : index
    %141 = memref.load %arg4[%c6_63] : memref<16xf32, #tpu.memory_space<smem>>
    %cst_64 = arith.constant 0.000000e+00 : f32
    %142 = vector.broadcast %cst_64 : f32 to vector<1x128xf32>
    %143 = arith.maximumf %140, %142 : vector<1x128xf32>
    %144 = vector.broadcast %141 : f32 to vector<1x128xf32>
    %145 = arith.mulf %144, %143 : vector<1x128xf32>
    %146 = arith.addf %126, %145 : vector<1x128xf32>
    %c7 = arith.constant 7 : index
    %c0_65 = arith.constant 0 : index
    %147 = memref.load %arg2[%c7, %c0_65] : memref<16x3xf32, #tpu.memory_space<smem>>
    %148 = vector.broadcast %147 : f32 to vector<1x128xf32>
    %149 = arith.mulf %148, %1 : vector<1x128xf32>
    %c7_66 = arith.constant 7 : index
    %c1_67 = arith.constant 1 : index
    %150 = memref.load %arg2[%c7_66, %c1_67] : memref<16x3xf32, #tpu.memory_space<smem>>
    %151 = vector.broadcast %150 : f32 to vector<1x128xf32>
    %152 = arith.mulf %151, %3 : vector<1x128xf32>
    %153 = arith.addf %149, %152 : vector<1x128xf32>
    %c7_68 = arith.constant 7 : index
    %c2_69 = arith.constant 2 : index
    %154 = memref.load %arg2[%c7_68, %c2_69] : memref<16x3xf32, #tpu.memory_space<smem>>
    %155 = vector.broadcast %154 : f32 to vector<1x128xf32>
    %156 = arith.mulf %155, %5 : vector<1x128xf32>
    %157 = arith.addf %153, %156 : vector<1x128xf32>
    %c7_70 = arith.constant 7 : index
    %158 = memref.load %arg3[%c7_70] : memref<16xf32, #tpu.memory_space<smem>>
    %159 = vector.broadcast %158 : f32 to vector<1x128xf32>
    %160 = arith.addf %157, %159 : vector<1x128xf32>
    %c7_71 = arith.constant 7 : index
    %161 = memref.load %arg4[%c7_71] : memref<16xf32, #tpu.memory_space<smem>>
    %cst_72 = arith.constant 0.000000e+00 : f32
    %162 = vector.broadcast %cst_72 : f32 to vector<1x128xf32>
    %163 = arith.maximumf %160, %162 : vector<1x128xf32>
    %164 = vector.broadcast %161 : f32 to vector<1x128xf32>
    %165 = arith.mulf %164, %163 : vector<1x128xf32>
    %166 = arith.addf %146, %165 : vector<1x128xf32>
    %c8 = arith.constant 8 : index
    %c0_73 = arith.constant 0 : index
    %167 = memref.load %arg2[%c8, %c0_73] : memref<16x3xf32, #tpu.memory_space<smem>>
    %168 = vector.broadcast %167 : f32 to vector<1x128xf32>
    %169 = arith.mulf %168, %1 : vector<1x128xf32>
    %c8_74 = arith.constant 8 : index
    %c1_75 = arith.constant 1 : index
    %170 = memref.load %arg2[%c8_74, %c1_75] : memref<16x3xf32, #tpu.memory_space<smem>>
    %171 = vector.broadcast %170 : f32 to vector<1x128xf32>
    %172 = arith.mulf %171, %3 : vector<1x128xf32>
    %173 = arith.addf %169, %172 : vector<1x128xf32>
    %c8_76 = arith.constant 8 : index
    %c2_77 = arith.constant 2 : index
    %174 = memref.load %arg2[%c8_76, %c2_77] : memref<16x3xf32, #tpu.memory_space<smem>>
    %175 = vector.broadcast %174 : f32 to vector<1x128xf32>
    %176 = arith.mulf %175, %5 : vector<1x128xf32>
    %177 = arith.addf %173, %176 : vector<1x128xf32>
    %c8_78 = arith.constant 8 : index
    %178 = memref.load %arg3[%c8_78] : memref<16xf32, #tpu.memory_space<smem>>
    %179 = vector.broadcast %178 : f32 to vector<1x128xf32>
    %180 = arith.addf %177, %179 : vector<1x128xf32>
    %c8_79 = arith.constant 8 : index
    %181 = memref.load %arg4[%c8_79] : memref<16xf32, #tpu.memory_space<smem>>
    %cst_80 = arith.constant 0.000000e+00 : f32
    %182 = vector.broadcast %cst_80 : f32 to vector<1x128xf32>
    %183 = arith.maximumf %180, %182 : vector<1x128xf32>
    %184 = vector.broadcast %181 : f32 to vector<1x128xf32>
    %185 = arith.mulf %184, %183 : vector<1x128xf32>
    %186 = arith.addf %166, %185 : vector<1x128xf32>
    %c9 = arith.constant 9 : index
    %c0_81 = arith.constant 0 : index
    %187 = memref.load %arg2[%c9, %c0_81] : memref<16x3xf32, #tpu.memory_space<smem>>
    %188 = vector.broadcast %187 : f32 to vector<1x128xf32>
    %189 = arith.mulf %188, %1 : vector<1x128xf32>
    %c9_82 = arith.constant 9 : index
    %c1_83 = arith.constant 1 : index
    %190 = memref.load %arg2[%c9_82, %c1_83] : memref<16x3xf32, #tpu.memory_space<smem>>
    %191 = vector.broadcast %190 : f32 to vector<1x128xf32>
    %192 = arith.mulf %191, %3 : vector<1x128xf32>
    %193 = arith.addf %189, %192 : vector<1x128xf32>
    %c9_84 = arith.constant 9 : index
    %c2_85 = arith.constant 2 : index
    %194 = memref.load %arg2[%c9_84, %c2_85] : memref<16x3xf32, #tpu.memory_space<smem>>
    %195 = vector.broadcast %194 : f32 to vector<1x128xf32>
    %196 = arith.mulf %195, %5 : vector<1x128xf32>
    %197 = arith.addf %193, %196 : vector<1x128xf32>
    %c9_86 = arith.constant 9 : index
    %198 = memref.load %arg3[%c9_86] : memref<16xf32, #tpu.memory_space<smem>>
    %199 = vector.broadcast %198 : f32 to vector<1x128xf32>
    %200 = arith.addf %197, %199 : vector<1x128xf32>
    %c9_87 = arith.constant 9 : index
    %201 = memref.load %arg4[%c9_87] : memref<16xf32, #tpu.memory_space<smem>>
    %cst_88 = arith.constant 0.000000e+00 : f32
    %202 = vector.broadcast %cst_88 : f32 to vector<1x128xf32>
    %203 = arith.maximumf %200, %202 : vector<1x128xf32>
    %204 = vector.broadcast %201 : f32 to vector<1x128xf32>
    %205 = arith.mulf %204, %203 : vector<1x128xf32>
    %206 = arith.addf %186, %205 : vector<1x128xf32>
    %c10 = arith.constant 10 : index
    %c0_89 = arith.constant 0 : index
    %207 = memref.load %arg2[%c10, %c0_89] : memref<16x3xf32, #tpu.memory_space<smem>>
    %208 = vector.broadcast %207 : f32 to vector<1x128xf32>
    %209 = arith.mulf %208, %1 : vector<1x128xf32>
    %c10_90 = arith.constant 10 : index
    %c1_91 = arith.constant 1 : index
    %210 = memref.load %arg2[%c10_90, %c1_91] : memref<16x3xf32, #tpu.memory_space<smem>>
    %211 = vector.broadcast %210 : f32 to vector<1x128xf32>
    %212 = arith.mulf %211, %3 : vector<1x128xf32>
    %213 = arith.addf %209, %212 : vector<1x128xf32>
    %c10_92 = arith.constant 10 : index
    %c2_93 = arith.constant 2 : index
    %214 = memref.load %arg2[%c10_92, %c2_93] : memref<16x3xf32, #tpu.memory_space<smem>>
    %215 = vector.broadcast %214 : f32 to vector<1x128xf32>
    %216 = arith.mulf %215, %5 : vector<1x128xf32>
    %217 = arith.addf %213, %216 : vector<1x128xf32>
    %c10_94 = arith.constant 10 : index
    %218 = memref.load %arg3[%c10_94] : memref<16xf32, #tpu.memory_space<smem>>
    %219 = vector.broadcast %218 : f32 to vector<1x128xf32>
    %220 = arith.addf %217, %219 : vector<1x128xf32>
    %c10_95 = arith.constant 10 : index
    %221 = memref.load %arg4[%c10_95] : memref<16xf32, #tpu.memory_space<smem>>
    %cst_96 = arith.constant 0.000000e+00 : f32
    %222 = vector.broadcast %cst_96 : f32 to vector<1x128xf32>
    %223 = arith.maximumf %220, %222 : vector<1x128xf32>
    %224 = vector.broadcast %221 : f32 to vector<1x128xf32>
    %225 = arith.mulf %224, %223 : vector<1x128xf32>
    %226 = arith.addf %206, %225 : vector<1x128xf32>
    %c11 = arith.constant 11 : index
    %c0_97 = arith.constant 0 : index
    %227 = memref.load %arg2[%c11, %c0_97] : memref<16x3xf32, #tpu.memory_space<smem>>
    %228 = vector.broadcast %227 : f32 to vector<1x128xf32>
    %229 = arith.mulf %228, %1 : vector<1x128xf32>
    %c11_98 = arith.constant 11 : index
    %c1_99 = arith.constant 1 : index
    %230 = memref.load %arg2[%c11_98, %c1_99] : memref<16x3xf32, #tpu.memory_space<smem>>
    %231 = vector.broadcast %230 : f32 to vector<1x128xf32>
    %232 = arith.mulf %231, %3 : vector<1x128xf32>
    %233 = arith.addf %229, %232 : vector<1x128xf32>
    %c11_100 = arith.constant 11 : index
    %c2_101 = arith.constant 2 : index
    %234 = memref.load %arg2[%c11_100, %c2_101] : memref<16x3xf32, #tpu.memory_space<smem>>
    %235 = vector.broadcast %234 : f32 to vector<1x128xf32>
    %236 = arith.mulf %235, %5 : vector<1x128xf32>
    %237 = arith.addf %233, %236 : vector<1x128xf32>
    %c11_102 = arith.constant 11 : index
    %238 = memref.load %arg3[%c11_102] : memref<16xf32, #tpu.memory_space<smem>>
    %239 = vector.broadcast %238 : f32 to vector<1x128xf32>
    %240 = arith.addf %237, %239 : vector<1x128xf32>
    %c11_103 = arith.constant 11 : index
    %241 = memref.load %arg4[%c11_103] : memref<16xf32, #tpu.memory_space<smem>>
    %cst_104 = arith.constant 0.000000e+00 : f32
    %242 = vector.broadcast %cst_104 : f32 to vector<1x128xf32>
    %243 = arith.maximumf %240, %242 : vector<1x128xf32>
    %244 = vector.broadcast %241 : f32 to vector<1x128xf32>
    %245 = arith.mulf %244, %243 : vector<1x128xf32>
    %246 = arith.addf %226, %245 : vector<1x128xf32>
    %c12 = arith.constant 12 : index
    %c0_105 = arith.constant 0 : index
    %247 = memref.load %arg2[%c12, %c0_105] : memref<16x3xf32, #tpu.memory_space<smem>>
    %248 = vector.broadcast %247 : f32 to vector<1x128xf32>
    %249 = arith.mulf %248, %1 : vector<1x128xf32>
    %c12_106 = arith.constant 12 : index
    %c1_107 = arith.constant 1 : index
    %250 = memref.load %arg2[%c12_106, %c1_107] : memref<16x3xf32, #tpu.memory_space<smem>>
    %251 = vector.broadcast %250 : f32 to vector<1x128xf32>
    %252 = arith.mulf %251, %3 : vector<1x128xf32>
    %253 = arith.addf %249, %252 : vector<1x128xf32>
    %c12_108 = arith.constant 12 : index
    %c2_109 = arith.constant 2 : index
    %254 = memref.load %arg2[%c12_108, %c2_109] : memref<16x3xf32, #tpu.memory_space<smem>>
    %255 = vector.broadcast %254 : f32 to vector<1x128xf32>
    %256 = arith.mulf %255, %5 : vector<1x128xf32>
    %257 = arith.addf %253, %256 : vector<1x128xf32>
    %c12_110 = arith.constant 12 : index
    %258 = memref.load %arg3[%c12_110] : memref<16xf32, #tpu.memory_space<smem>>
    %259 = vector.broadcast %258 : f32 to vector<1x128xf32>
    %260 = arith.addf %257, %259 : vector<1x128xf32>
    %c12_111 = arith.constant 12 : index
    %261 = memref.load %arg4[%c12_111] : memref<16xf32, #tpu.memory_space<smem>>
    %cst_112 = arith.constant 0.000000e+00 : f32
    %262 = vector.broadcast %cst_112 : f32 to vector<1x128xf32>
    %263 = arith.maximumf %260, %262 : vector<1x128xf32>
    %264 = vector.broadcast %261 : f32 to vector<1x128xf32>
    %265 = arith.mulf %264, %263 : vector<1x128xf32>
    %266 = arith.addf %246, %265 : vector<1x128xf32>
    %c13 = arith.constant 13 : index
    %c0_113 = arith.constant 0 : index
    %267 = memref.load %arg2[%c13, %c0_113] : memref<16x3xf32, #tpu.memory_space<smem>>
    %268 = vector.broadcast %267 : f32 to vector<1x128xf32>
    %269 = arith.mulf %268, %1 : vector<1x128xf32>
    %c13_114 = arith.constant 13 : index
    %c1_115 = arith.constant 1 : index
    %270 = memref.load %arg2[%c13_114, %c1_115] : memref<16x3xf32, #tpu.memory_space<smem>>
    %271 = vector.broadcast %270 : f32 to vector<1x128xf32>
    %272 = arith.mulf %271, %3 : vector<1x128xf32>
    %273 = arith.addf %269, %272 : vector<1x128xf32>
    %c13_116 = arith.constant 13 : index
    %c2_117 = arith.constant 2 : index
    %274 = memref.load %arg2[%c13_116, %c2_117] : memref<16x3xf32, #tpu.memory_space<smem>>
    %275 = vector.broadcast %274 : f32 to vector<1x128xf32>
    %276 = arith.mulf %275, %5 : vector<1x128xf32>
    %277 = arith.addf %273, %276 : vector<1x128xf32>
    %c13_118 = arith.constant 13 : index
    %278 = memref.load %arg3[%c13_118] : memref<16xf32, #tpu.memory_space<smem>>
    %279 = vector.broadcast %278 : f32 to vector<1x128xf32>
    %280 = arith.addf %277, %279 : vector<1x128xf32>
    %c13_119 = arith.constant 13 : index
    %281 = memref.load %arg4[%c13_119] : memref<16xf32, #tpu.memory_space<smem>>
    %cst_120 = arith.constant 0.000000e+00 : f32
    %282 = vector.broadcast %cst_120 : f32 to vector<1x128xf32>
    %283 = arith.maximumf %280, %282 : vector<1x128xf32>
    %284 = vector.broadcast %281 : f32 to vector<1x128xf32>
    %285 = arith.mulf %284, %283 : vector<1x128xf32>
    %286 = arith.addf %266, %285 : vector<1x128xf32>
    %c14 = arith.constant 14 : index
    %c0_121 = arith.constant 0 : index
    %287 = memref.load %arg2[%c14, %c0_121] : memref<16x3xf32, #tpu.memory_space<smem>>
    %288 = vector.broadcast %287 : f32 to vector<1x128xf32>
    %289 = arith.mulf %288, %1 : vector<1x128xf32>
    %c14_122 = arith.constant 14 : index
    %c1_123 = arith.constant 1 : index
    %290 = memref.load %arg2[%c14_122, %c1_123] : memref<16x3xf32, #tpu.memory_space<smem>>
    %291 = vector.broadcast %290 : f32 to vector<1x128xf32>
    %292 = arith.mulf %291, %3 : vector<1x128xf32>
    %293 = arith.addf %289, %292 : vector<1x128xf32>
    %c14_124 = arith.constant 14 : index
    %c2_125 = arith.constant 2 : index
    %294 = memref.load %arg2[%c14_124, %c2_125] : memref<16x3xf32, #tpu.memory_space<smem>>
    %295 = vector.broadcast %294 : f32 to vector<1x128xf32>
    %296 = arith.mulf %295, %5 : vector<1x128xf32>
    %297 = arith.addf %293, %296 : vector<1x128xf32>
    %c14_126 = arith.constant 14 : index
    %298 = memref.load %arg3[%c14_126] : memref<16xf32, #tpu.memory_space<smem>>
    %299 = vector.broadcast %298 : f32 to vector<1x128xf32>
    %300 = arith.addf %297, %299 : vector<1x128xf32>
    %c14_127 = arith.constant 14 : index
    %301 = memref.load %arg4[%c14_127] : memref<16xf32, #tpu.memory_space<smem>>
    %cst_128 = arith.constant 0.000000e+00 : f32
    %302 = vector.broadcast %cst_128 : f32 to vector<1x128xf32>
    %303 = arith.maximumf %300, %302 : vector<1x128xf32>
    %304 = vector.broadcast %301 : f32 to vector<1x128xf32>
    %305 = arith.mulf %304, %303 : vector<1x128xf32>
    %306 = arith.addf %286, %305 : vector<1x128xf32>
    %c15 = arith.constant 15 : index
    %c0_129 = arith.constant 0 : index
    %307 = memref.load %arg2[%c15, %c0_129] : memref<16x3xf32, #tpu.memory_space<smem>>
    %308 = vector.broadcast %307 : f32 to vector<1x128xf32>
    %309 = arith.mulf %308, %1 : vector<1x128xf32>
    %c15_130 = arith.constant 15 : index
    %c1_131 = arith.constant 1 : index
    %310 = memref.load %arg2[%c15_130, %c1_131] : memref<16x3xf32, #tpu.memory_space<smem>>
    %311 = vector.broadcast %310 : f32 to vector<1x128xf32>
    %312 = arith.mulf %311, %3 : vector<1x128xf32>
    %313 = arith.addf %309, %312 : vector<1x128xf32>
    %c15_132 = arith.constant 15 : index
    %c2_133 = arith.constant 2 : index
    %314 = memref.load %arg2[%c15_132, %c2_133] : memref<16x3xf32, #tpu.memory_space<smem>>
    %315 = vector.broadcast %314 : f32 to vector<1x128xf32>
    %316 = arith.mulf %315, %5 : vector<1x128xf32>
    %317 = arith.addf %313, %316 : vector<1x128xf32>
    %c15_134 = arith.constant 15 : index
    %318 = memref.load %arg3[%c15_134] : memref<16xf32, #tpu.memory_space<smem>>
    %319 = vector.broadcast %318 : f32 to vector<1x128xf32>
    %320 = arith.addf %317, %319 : vector<1x128xf32>
    %c15_135 = arith.constant 15 : index
    %321 = memref.load %arg4[%c15_135] : memref<16xf32, #tpu.memory_space<smem>>
    %cst_136 = arith.constant 0.000000e+00 : f32
    %322 = vector.broadcast %cst_136 : f32 to vector<1x128xf32>
    %323 = arith.maximumf %320, %322 : vector<1x128xf32>
    %324 = vector.broadcast %321 : f32 to vector<1x128xf32>
    %325 = arith.mulf %324, %323 : vector<1x128xf32>
    %326 = arith.addf %306, %325 : vector<1x128xf32>
    %c0_137 = arith.constant 0 : index
    %327 = memref.load %arg5[%c0_137] : memref<1xf32, #tpu.memory_space<smem>>
    %328 = vector.broadcast %327 : f32 to vector<1x128xf32>
    %329 = arith.addf %326, %328 : vector<1x128xf32>
    %cst_138 = arith.constant 5.000000e-01 : f32
    %330 = vector.broadcast %cst_138 : f32 to vector<1x128xf32>
    %331 = arith.mulf %330, %329 : vector<1x128xf32>
    %332 = math.tanh %331 : vector<1x128xf32>
    %cst_139 = arith.constant 5.000000e-01 : f32
    %333 = vector.broadcast %cst_139 : f32 to vector<1x128xf32>
    %334 = arith.mulf %333, %332 : vector<1x128xf32>
    %cst_140 = arith.constant 5.000000e-01 : f32
    %335 = vector.broadcast %cst_140 : f32 to vector<1x128xf32>
    %336 = arith.addf %334, %335 : vector<1x128xf32>
    %c0_141 = arith.constant 0 : index
    %c0_142 = arith.constant 0 : index
    %337 = vector.load %arg6[%c0_141, %c0_142] : memref<1x128xf32, #tpu.memory_space<vmem>>, vector<1x128xf32>
    tpu.vector_store %arg6[%c0_141, %c0_142], %336 {strides = array<i32>} : memref<1x128xf32, #tpu.memory_space<vmem>>, vector<1x128xf32>,
    return
  }
  func.func @transform_0(%arg0: i32) -> (i32, i32, i32) {
    %c0_i32 = arith.constant 0 : i32
    %c0_i32_0 = arith.constant 0 : i32
    %c0_i32_1 = arith.constant 0 : i32
    return %c0_i32, %arg0, %c0_i32_0 : i32, i32, i32
  }
  func.func @transform_1(%arg0: i32) -> (i32, i32) {
    %c0_i32 = arith.constant 0 : i32
    %c0_i32_0 = arith.constant 0 : i32
    %c0_i32_1 = arith.constant 0 : i32
    return %c0_i32, %c0_i32_0 : i32, i32
  }
  func.func @transform_2(%arg0: i32) -> i32 {
    %c0_i32 = arith.constant 0 : i32
    %c0_i32_0 = arith.constant 0 : i32
    return %c0_i32 : i32
  }
  func.func @transform_3(%arg0: i32) -> i32 {
    %c0_i32 = arith.constant 0 : i32
    %c0_i32_0 = arith.constant 0 : i32
    return %c0_i32 : i32
  }
  func.func @transform_4(%arg0: i32) -> i32 {
    %c0_i32 = arith.constant 0 : i32
    %c0_i32_0 = arith.constant 0 : i32
    return %c0_i32 : i32
  }
  func.func @transform_5(%arg0: i32) -> (i32, i32) {
    %c0_i32 = arith.constant 0 : i32
    %c0_i32_0 = arith.constant 0 : i32
    return %arg0, %c0_i32 : i32, i32
  }
}

</mosaic_0001>

<bundles_post_ra>
// kernel: tpu_custom_call.1
= control target key start
LH: loop header
LB: loop body
LE: loop exit
PB: predicated region body
PF: predicated region fallthrough
CT: control target
= control target key end

     0   :  { %11 = vsyncpa [#allocation5], 0  ;;  %s886_s0 = inlined_call_operand.vmem [shape: f32[3,1,128], index: 0, kind: input, shape index: {}]   ;;  %s887_s1 = inlined_call_operand.vmem [shape: f32[16,3], index: 1, kind: input, shape index: {}]   ;;  %s888_s2 = inlined_call_operand.vmem [shape: f32[16], index: 2, kind: input, shape index: {}]   ;;  %s889_s3 = inlined_call_operand.vmem [shape: f32[16], index: 3, kind: input, shape index: {}]   ;;  %s890_s4 = inlined_call_operand.<no memory space> [shape: f32[1], index: 4, kind: input, shape index: {}]   ;;  %s891_s5 = inlined_call_operand.hbm [shape: f32[1,128], index: 5, kind: output, shape index: {}]  }
   0x1   :  { %12 = vsyncpa [#allocation7], 0  ;;  %s34_s20 = sshll.u32 %s888_s2, 4  ;;  %s35_s20 = int_to_ptr.vmem [resolvable:$true] %s34_s20 }
   0x2   :  { %13 = vsyncpa [#allocation4], 0  ;;  %s21_s23 = sshll.u32 %s887_s1, 4  ;;  %s480_s24 = scalar_lea.vmem %s35_s20, 16  ;;  %s22_s23 = int_to_ptr.vmem [resolvable:$true] %s21_s23 }
   0x3   :  { %p481_p0 = scmp.ne.s32.totalorder %s35_s20, %s480_s24  ;;  %p485_p1 = scmp.lt.s32.totalorder %s35_s20, %s35_s20 }
   0x4   :  { %p486_p2 = scmp.lt.s32.totalorder %s480_s24, %s480_s24 }
   0x6   :  { %p487_p3 = por %p486_p2, %p485_p1 }
   0x8   :  { %p488_p4 = pnand %p487_p3, %p481_p0 }
   0xa   :  { %491 = shalt.err (!%p488_p4)
}
   0xb   :  { %s544_s25 = smov [#allocation6]   ;;  %s492_s26 = scalar_lea.vmem %s22_s23, 256 }
   0xc   :  { %37 = dma.vmem_to_smem %s35_s20, 16, %s544_s25, [#allocation7]  }
   0xd   :  { %p493_p5 = scmp.ne.s32.totalorder %s22_s23, %s492_s26  ;;  %p497_p6 = scmp.lt.s32.totalorder %s22_s23, %s22_s23 }
   0xe   :  { %p498_p7 = scmp.lt.s32.totalorder %s492_s26, %s492_s26 }
  0x10   :  { %p499_p8 = por %p498_p7, %p497_p6 }
  0x12   :  { %p500_p9 = pnand %p499_p8, %p493_p5 }
  0x14   :  { %503 = shalt.err (!%p500_p9)
}
  0x15   :  { %s545_s2 = smov [#allocation3]   ;;  %s546_s27 = smov 128  }
  0x16   :  { %s547_s1 = smov 8   ;;  %s44_s30 = sshll.u32 %s889_s3, 4  ;;  %s45_s30 = int_to_ptr.vmem [resolvable:$true] %s44_s30 }
  0x17   :  { %27 = dma.vmem_to_smem %s22_s23, 256, %s545_s2, [#allocation5], %s546_s27, %s546_s27, %s547_s1  }
  0x18   :  { %s504_s6 = scalar_lea.vmem %s45_s30, 16  ;;  %p509_p11 = scmp.lt.s32.totalorder %s45_s30, %s45_s30 }
  0x19   :  { %p505_p10 = scmp.ne.s32.totalorder %s45_s30, %s504_s6  ;;  %p510_p12 = scmp.lt.s32.totalorder %s504_s6, %s504_s6 }
  0x1b   :  { %p511_p13 = por %p510_p12, %p509_p11 }
  0x1d   :  { %p512_p0 = pnand %p511_p13, %p505_p10 }
  0x1f   :  { %515 = shalt.err (!%p512_p0)
}
  0x20   :  { %s548_s7 = smov [#allocation8]  }
  0x21   :  { %47 = dma.vmem_to_smem %s45_s30, 16, %s548_s7, [#allocation7]  }
  0x22   :  { %538 = dma.done.wait [#allocation5], 256  }
  0x23   :  { %539 = vsyncadd [#allocation5], 4294967040 }
  0x24   :  { %540 = dma.done.wait [#allocation7], 32  }
  0x25   :  { %541 = vsyncadd [#allocation7], 4294967264 }
  0x26   :  { %59 = sfence }
  0x27   :  { %s65_s8 = sld [smem:[#allocation3]]  ;;  %s395_s9 = sld [smem:[#allocation3 + $0x1]]  ;;  %v596_v0 = vld [vmem:[%s886_s0] sm:$0x1]  ;;  %v601_v1 = vld [vmem:[%s886_s0 + $0x1] sm:$0x1] }
  0x28   :  { %s396_s10 = sld [smem:[#allocation3 + $0x2]]  ;;  %s589_s11 = sld [smem:[#allocation6]]  ;;  %v610_v2 = vld [vmem:[%s886_s0 + $0x2] sm:$0x1] }
  0x29   :  { %s591_s3 = sld [smem:[#allocation8]]  ;;  %s398_s15 = sld [smem:[#allocation3 + $0x81]] }
  0x2a   :  { %s397_s12 = sld [smem:[#allocation3 + $0x80]]  ;;  %s399_s16 = sld [smem:[#allocation3 + $0x82]] }
  0x2b   :  { %s603_s19 = sld [smem:[#allocation6 + $0x1]]  ;;  %s612_s23 = sld [smem:[#allocation3 + $0x100]] }
  0x2c   :  { %s605_s20 = sld [smem:[#allocation8 + $0x1]]  ;;  %s616_s25 = sld [smem:[#allocation3 + $0x102]] }
  0x2d   :  { %s614_s24 = sld [smem:[#allocation3 + $0x101]]  ;;  %v66_v3 = vstv %s65_s8  ;;  %v69_v4 = vstv %s395_s9  ;;  %s618_s26 = sld [smem:[#allocation6 + $0x2]] }
  0x2e   :  { %v67_v5 = vmul.f32 %v66_v3, %v596_v0  ;;  %v70_v6 = vmul.f32 %v601_v1, %v69_v4  ;;  %v73_v7 = vstv %s396_s10  ;;  %s622_s2 = sld [smem:[#allocation8 + $0x2]]  ;;  %s624_s0 = sld [smem:[#allocation3 + $0x180]]  ;;  %v77_v14 = vstv %s589_s11 }
  0x2f   :  { %v74_v8 = vmul.f32 %v610_v2, %v73_v7  ;;  %s627_s27 = sld [smem:[#allocation3 + $0x181]]  ;;  %s629_s1 = sld [smem:[#allocation3 + $0x182]]  ;;  %v88_v12 = vstv %s398_s15  ;;  %v81_v15 = vstv %s591_s3 }
  0x30   :  { %v85_v9 = vstv %s397_s12  ;;  %v71_v10 = vadd.f32 %v70_v6, %v67_v5  ;;  %v92_v13 = vstv %s399_s16  ;;  %s632_s28 = sld [smem:[#allocation6 + $0x3]]  ;;  %v89_v16 = vmul.f32 %v601_v1, %v88_v12  ;;  %s638_s29 = sld [smem:[#allocation3 + $0x200]] }
  0x31   :  { %v86_v11 = vmul.f32 %v85_v9, %v596_v0  ;;  %v93_v17 = vmul.f32 %v610_v2, %v92_v13  ;;  %s640_s30 = sld [smem:[#allocation3 + $0x201]]  ;;  %v96_v19 = vstv %s603_s19  ;;  %v104_v20 = vstv %s612_s23  ;;  %s645_s6 = sld [smem:[#allocation8 + $0x3]] }
  0x32   :  { %v75_v18 = vadd.f32 %v74_v8, %v71_v10  ;;  %s647_s7 = sld [smem:[#allocation3 + $0x202]]  ;;  %v105_v23 = vmul.f32 %v104_v20, %v596_v0  ;;  %v111_v25 = vstv %s616_s25  ;;  %s652_s8 = sld [smem:[#allocation6 + $0x4]]  ;;  %v100_v27 = vstv %s605_s20 }
  0x33   :  { %v107_v21 = vstv %s614_s24  ;;  %v90_v22 = vadd.f32 %v89_v16, %v86_v11  ;;  %v112_v28 = vmul.f32 %v610_v2, %v111_v25  ;;  %v115_v29 = vstv %s618_s26  ;;  %s657_s9 = sld [smem:[#allocation3 + $0x280]]  ;;  %s659_s10 = sld [smem:[#allocation3 + $0x281]] }
  0x34   :  { %v108_v24 = vmul.f32 %v601_v1, %v107_v21  ;;  %v78_v26 = vadd.f32 %v77_v14, %v75_v18  ;;  %v123_v32 = vstv %s624_s0  ;;  %s666_s11 = sld [smem:[#allocation8 + $0x4]]  ;;  %s668_s3 = sld [smem:[#allocation3 + $0x282]]  ;;  %v119_v40 = vstv %s622_s2 }
  0x35   :  { %v94_v30 = vadd.f32 %v93_v17, %v90_v22  ;;  %v126_v33 = vstv %s627_s27  ;;  %v124_v35 = vmul.f32 %v123_v32, %v596_v0  ;;  %v130_v37 = vstv %s629_s1  ;;  %s672_s12 = sld [smem:[#allocation6 + $0x5]]  ;;  %s676_s13 = sld [smem:[#allocation3 + $0x300]] }
  0x36   :  { %v109_v31 = vadd.f32 %v108_v24, %v105_v23  ;;  %v80_v34 = vmax.f32 %v78_v26, 0.0  ;;  %v127_v36 = vmul.f32 %v601_v1, %v126_v33  ;;  %v131_v41 = vmul.f32 %v610_v2, %v130_v37  ;;  %s678_s14 = sld [smem:[#allocation3 + $0x301]]  ;;  %s682_s15 = sld [smem:[#allocation3 + $0x302]] }
  0x37   :  { %v97_v38 = vadd.f32 %v96_v19, %v94_v30  ;;  %v134_v44 = vstv %s632_s28  ;;  %v142_v45 = vstv %s638_s29  ;;  %v145_v49 = vstv %s640_s30  ;;  %s687_s16 = sld [smem:[#allocation8 + $0x5]]  ;;  %s691_s17 = sld [smem:[#allocation6 + $0x6]] }
  0x38   :  { %v113_v39 = vadd.f32 %v112_v28, %v109_v31  ;;  %v82_v42 = vmul.f32 %v81_v15, %v80_v34  ;;  %v128_v43 = vadd.f32 %v127_v36, %v124_v35  ;;  %v143_v48 = vmul.f32 %v142_v45, %v596_v0  ;;  %s693_s18 = sld [smem:[#allocation3 + $0x380]]  ;;  %s697_s19 = sld [smem:[#allocation3 + $0x381]] }
  0x39   :  { %v99_v46 = vmax.f32 %v97_v38, 0.0  ;;  %v138_v51 = vstv %s645_s6  ;;  %v146_v52 = vmul.f32 %v601_v1, %v145_v49  ;;  %v149_v53 = vstv %s647_s7  ;;  %s699_s20 = sld [smem:[#allocation3 + $0x382]]  ;;  %s703_s21 = sld [smem:[#allocation8 + $0x6]] }
  0x3a   :  { %v116_v47 = vadd.f32 %v115_v29, %v113_v39  ;;  %v132_v50 = vadd.f32 %v131_v41, %v128_v43  ;;  %v150_v56 = vmul.f32 %v610_v2, %v149_v53  ;;  %v153_v57 = vstv %s652_s8  ;;  %s707_s22 = sld [smem:[#allocation6 + $0x7]]  ;;  %s709_s23 = sld [smem:[#allocation3 + $0x400]] }
  0x3b   :  { %v101_v54 = vmul.f32 %v100_v27, %v99_v46  ;;  %v147_v59 = vadd.f32 %v146_v52, %v143_v48  ;;  %v161_v60 = vstv %s657_s9  ;;  %v164_v61 = vstv %s659_s10  ;;  %s713_s24 = sld [smem:[#allocation8 + $0x7]]  ;;  %s715_s25 = sld [smem:[#allocation3 + $0x401]] }
  0x3c   :  { %v118_v55 = vmax.f32 %v116_v47, 0.0  ;;  %v135_v58 = vadd.f32 %v134_v44, %v132_v50  ;;  %v162_v3 = vmul.f32 %v161_v60, %v596_v0  ;;  %v165_v4 = vmul.f32 %v601_v1, %v164_v61  ;;  %s719_s26 = sld [smem:[#allocation3 + $0x402]]  ;;  %s721_s2 = sld [smem:[#allocation6 + $0x8]] }
  0x3d   :  { %v102_v62 = vadd.f32 %v101_v54, %v82_v42  ;;  %v151_v6 = vadd.f32 %v150_v56, %v147_v59  ;;  %v157_v7 = vstv %s666_s11  ;;  %v168_v8 = vstv %s668_s3  ;;  %s726_s0 = sld [smem:[#allocation3 + $0x480]]  ;;  %s730_s27 = sld [smem:[#allocation3 + $0x481]] }
  0x3e   :  { %v120_v63 = vmul.f32 %v119_v40, %v118_v55  ;;  %v137_v5 = vmax.f32 %v135_v58, 0.0  ;;  %v166_v10 = vadd.f32 %v165_v4, %v162_v3  ;;  %v169_v11 = vmul.f32 %v610_v2, %v168_v8  ;;  %s732_s1 = sld [smem:[#allocation3 + $0x482]]  ;;  %s739_s28 = sld [smem:[#allocation8 + $0x8]] }
  0x3f   :  { %v172_v12 = vstv %s672_s12  ;;  %v154_v14 = vadd.f32 %v153_v57, %v151_v6  ;;  %v180_v15 = vstv %s676_s13  ;;  %v183_v16 = vstv %s678_s14  ;;  %s741_s29 = sld [smem:[#allocation6 + $0x9]]  ;;  %s745_s30 = sld [smem:[#allocation3 + $0x500]] }
  0x40   :  { %v121_v9 = vadd.f32 %v120_v63, %v102_v62  ;;  %v139_v13 = vmul.f32 %v138_v51, %v137_v5  ;;  %v170_v17 = vadd.f32 %v169_v11, %v166_v10  ;;  %v181_v18 = vmul.f32 %v180_v15, %v596_v0  ;;  %s750_s6 = sld [smem:[#allocation3 + $0x501]]  ;;  %s752_s7 = sld [smem:[#allocation3 + $0x502]] }
  0x41   :  { %v184_v19 = vmul.f32 %v601_v1, %v183_v16  ;;  %v187_v20 = vstv %s682_s15  ;;  %v156_v22 = vmax.f32 %v154_v14, 0.0  ;;  %v176_v23 = vstv %s687_s16  ;;  %s755_s8 = sld [smem:[#allocation8 + $0x9]]  ;;  %s761_s9 = sld [smem:[#allocation6 + $0xa]] }
  0x42   :  { %v140_v21 = vadd.f32 %v139_v13, %v121_v9  ;;  %v188_v24 = vmul.f32 %v610_v2, %v187_v20  ;;  %v173_v25 = vadd.f32 %v172_v12, %v170_v17  ;;  %v191_v27 = vstv %s691_s17  ;;  %s763_s10 = sld [smem:[#allocation3 + $0x580]]  ;;  %s766_s11 = sld [smem:[#allocation8 + $0xa]] }
  0x43   :  { %v185_v26 = vadd.f32 %v184_v19, %v181_v18  ;;  %v199_v28 = vstv %s693_s18  ;;  %v158_v29 = vmul.f32 %v157_v7, %v156_v22  ;;  %v202_v31 = vstv %s697_s19  ;;  %s772_s3 = sld [smem:[#allocation3 + $0x581]]  ;;  %s774_s12 = sld [smem:[#allocation3 + $0x582]] }
  0x44   :  { %v200_v30 = vmul.f32 %v199_v28, %v596_v0  ;;  %v206_v32 = vstv %s699_s20  ;;  %v175_v33 = vmax.f32 %v173_v25, 0.0  ;;  %v203_v35 = vmul.f32 %v601_v1, %v202_v31  ;;  %s777_s13 = sld [smem:[#allocation6 + $0xb]]  ;;  %s783_s14 = sld [smem:[#allocation3 + $0x600]] }
  0x45   :  { %v189_v34 = vadd.f32 %v188_v24, %v185_v26  ;;  %v207_v36 = vmul.f32 %v610_v2, %v206_v32  ;;  %v159_v37 = vadd.f32 %v158_v29, %v140_v21  ;;  %v195_v38 = vstv %s703_s21  ;;  %s785_s15 = sld [smem:[#allocation3 + $0x601]]  ;;  %s791_s16 = sld [smem:[#allocation8 + $0xb]] }
  0x46   :  { %v210_v39 = vstv %s707_s22  ;;  %v218_v40 = vstv %s709_s23  ;;  %v177_v41 = vmul.f32 %v176_v23, %v175_v33  ;;  %v204_v43 = vadd.f32 %v203_v35, %v200_v30  ;;  %s793_s17 = sld [smem:[#allocation3 + $0x602]]  ;;  %s797_s18 = sld [smem:[#allocation6 + $0xc]] }
  0x47   :  { %v192_v42 = vadd.f32 %v191_v27, %v189_v34  ;;  %v219_v44 = vmul.f32 %v218_v40, %v596_v0  ;;  %v214_v45 = vstv %s713_s24  ;;  %v221_v46 = vstv %s715_s25  ;;  %s802_s19 = sld [smem:[#allocation3 + $0x680]]  ;;  %s804_s20 = sld [smem:[#allocation3 + $0x681]] }
  0x48   :  { %v225_v47 = vstv %s719_s26  ;;  %v229_v48 = vstv %s721_s2  ;;  %v178_v49 = vadd.f32 %v177_v41, %v159_v37  ;;  %v208_v51 = vadd.f32 %v207_v36, %v204_v43  ;;  %s807_s21 = sld [smem:[#allocation8 + $0xc]]  ;;  %s812_s22 = sld [smem:[#allocation3 + $0x682]] }
  0x49   :  { %v194_v50 = vmax.f32 %v192_v42, 0.0  ;;  %v222_v52 = vmul.f32 %v601_v1, %v221_v46  ;;  %v226_v53 = vmul.f32 %v610_v2, %v225_v47  ;;  %v237_v54 = vstv %s726_s0  ;;  %s814_s23 = sld [smem:[#allocation6 + $0xd]]  ;;  %s818_s24 = sld [smem:[#allocation3 + $0x700]] }
  0x4a   :  { %v240_v55 = vstv %s730_s27  ;;  %v244_v56 = vstv %s732_s1  ;;  %v211_v58 = vadd.f32 %v210_v39, %v208_v51  ;;  %v238_v60 = vmul.f32 %v237_v54, %v596_v0  ;;  %s823_s25 = sld [smem:[#allocation3 + $0x701]]  ;;  %s825_s26 = sld [smem:[#allocation3 + $0x702]] }
  0x4b   :  { %v196_v57 = vmul.f32 %v195_v38, %v194_v50  ;;  %v223_v59 = vadd.f32 %v222_v52, %v219_v44  ;;  %v233_v61 = vstv %s739_s28  ;;  %v241_v62 = vmul.f32 %v601_v1, %v240_v55  ;;  %s831_s2 = sld [smem:[#allocation8 + $0xd]]  ;;  %s833_s0 = sld [smem:[#allocation6 + $0xe]] }
  0x4c   :  { %v245_v63 = vmul.f32 %v610_v2, %v244_v56  ;;  %v248_v3 = vstv %s741_s29  ;;  %v213_v5 = vmax.f32 %v211_v58, 0.0  ;;  %v256_v7 = vstv %s745_s30  ;;  %s837_s27 = sld [smem:[#allocation3 + $0x780]]  ;;  %s841_s1 = sld [smem:[#allocation3 + $0x781]] }
  0x4d   :  { %v197_v4 = vadd.f32 %v196_v57, %v178_v49  ;;  %v227_v6 = vadd.f32 %v226_v53, %v223_v59  ;;  %v242_v8 = vadd.f32 %v241_v62, %v238_v60  ;;  %v257_v9 = vmul.f32 %v256_v7, %v596_v0  ;;  %s843_s28 = sld [smem:[#allocation3 + $0x782]]  ;;  %s854_s29 = sld [smem:[#allocation8 + $0xe]] }
  0x4e   :  { %v259_v10 = vstv %s750_s6  ;;  %v263_v11 = vstv %s752_s7  ;;  %v215_v12 = vmul.f32 %v214_v45, %v213_v5  ;;  %v252_v17 = vstv %s755_s8  ;;  %s856_s30 = sld [smem:[#allocation6 + $0xf]] }
  0x4f   :  { %v230_v13 = vadd.f32 %v229_v48, %v227_v6  ;;  %v260_v14 = vmul.f32 %v601_v1, %v259_v10  ;;  %v264_v15 = vmul.f32 %v610_v2, %v263_v11  ;;  %v246_v16 = vadd.f32 %v245_v63, %v242_v8  ;;  %s471_s6 = sld [smem:[#allocation8 + $0xf]] }
  0x50   :  { %v267_v18 = vstv %s761_s9  ;;  %v275_v19 = vstv %s763_s10  ;;  %v216_v20 = vadd.f32 %v215_v12, %v197_v4  ;;  %v271_v25 = vstv %s766_s11  ;;  %s549_s9 = smov [#allocation9]  }
  0x51   :  { %v232_v21 = vmax.f32 %v230_v13, 0.0  ;;  %v261_v22 = vadd.f32 %v260_v14, %v257_v9  ;;  %v276_v23 = vmul.f32 %v275_v19, %v596_v0  ;;  %v249_v24 = vadd.f32 %v248_v3, %v246_v16  ;;  %s383_s10 = sshll.u32 %s549_s9, 4  ;;  %s384_s10 = int_to_ptr.vmem [resolvable:$true] %s383_s10 }
  0x52   :  { %v278_v26 = vstv %s772_s3  ;;  %v282_v27 = vstv %s774_s12  ;;  %v286_v33 = vstv %s777_s13  ;;  %v294_v34 = vstv %s783_s14  ;;  %s516_s11 = scalar_lea.vmem %s384_s10, 16  ;;  %s520_s3 = scalar_lea.vmem %s384_s10, 32 }
  0x53   :  { %v234_v28 = vmul.f32 %v233_v61, %v232_v21  ;;  %v265_v29 = vadd.f32 %v264_v15, %v261_v22  ;;  %v279_v30 = vmul.f32 %v601_v1, %v278_v26  ;;  %v283_v31 = vmul.f32 %v610_v2, %v282_v27  ;;  %p517_p1 = scmp.ne.s32.totalorder %s384_s10, %s516_s11  ;;  %p521_p2 = scmp.lt.s32.totalorder %s384_s10, %s384_s10 }
  0x54   :  { %v251_v32 = vmax.f32 %v249_v24, 0.0  ;;  %v297_v35 = vstv %s785_s15  ;;  %v295_v39 = vmul.f32 %v294_v34, %v596_v0  ;;  %v290_v41 = vstv %s791_s16  ;;  %p522_p3 = scmp.lt.s32.totalorder %s520_s3, %s516_s11 }
  0x55   :  { %v235_v36 = vadd.f32 %v234_v28, %v216_v20  ;;  %v268_v37 = vadd.f32 %v267_v18, %v265_v29  ;;  %v280_v38 = vadd.f32 %v279_v30, %v276_v23  ;;  %v298_v42 = vmul.f32 %v601_v1, %v297_v35 }
  0x56   :  { %v253_v40 = vmul.f32 %v252_v17, %v251_v32  ;;  %v301_v43 = vstv %s793_s17  ;;  %v305_v47 = vstv %s797_s18  ;;  %v313_v50 = vstv %s802_s19  ;;  %p523_p4 = por %p522_p3, %p521_p2 }
  0x57   :  { %v270_v44 = vmax.f32 %v268_v37, 0.0  ;;  %v284_v45 = vadd.f32 %v283_v31, %v280_v38  ;;  %v302_v46 = vmul.f32 %v610_v2, %v301_v43  ;;  %v299_v49 = vadd.f32 %v298_v42, %v295_v39 }
  0x58   :  { %v254_v48 = vadd.f32 %v253_v40, %v235_v36  ;;  %v316_v51 = vstv %s804_s20  ;;  %v314_v54 = vmul.f32 %v313_v50, %v596_v0  ;;  %v309_v57 = vstv %s807_s21  ;;  %p524_p5 = pnand %p523_p4, %p517_p1 }
  0x59   :  { %v272_v52 = vmul.f32 %v271_v25, %v270_v44  ;;  %v287_v53 = vadd.f32 %v286_v33, %v284_v45  ;;  %v317_v55 = vmul.f32 %v601_v1, %v316_v51  ;;  %v303_v56 = vadd.f32 %v302_v46, %v299_v49 }
  0x5a   :  { %v320_v58 = vstv %s812_s22  ;;  %v324_v59 = vstv %s814_s23  ;;  %v332_v4 = vstv %s818_s24  ;;  %v335_v5 = vstv %s823_s25 }
  0x5b   :  { %v273_v60 = vadd.f32 %v272_v52, %v254_v48  ;;  %v289_v61 = vmax.f32 %v287_v53, 0.0  ;;  %v318_v62 = vadd.f32 %v317_v55, %v314_v54  ;;  %v321_v63 = vmul.f32 %v610_v2, %v320_v58 }
  0x5c   :  { %v306_v3 = vadd.f32 %v305_v47, %v303_v56  ;;  %v339_v6 = vstv %s825_s26  ;;  %v333_v9 = vmul.f32 %v332_v4, %v596_v0  ;;  %v336_v10 = vmul.f32 %v601_v1, %v335_v5 }
  0x5d   :  { %v291_v7 = vmul.f32 %v290_v41, %v289_v61  ;;  %v322_v8 = vadd.f32 %v321_v63, %v318_v62  ;;  %v328_v12 = vstv %s831_s2  ;;  %v340_v13 = vmul.f32 %v610_v2, %v339_v6 }
  0x5e   :  { %v308_v11 = vmax.f32 %v306_v3, 0.0  ;;  %v343_v14 = vstv %s833_s0  ;;  %v337_v17 = vadd.f32 %v336_v10, %v333_v9  ;;  %v351_v18 = vstv %s837_s27 }
  0x5f   :  { %v292_v15 = vadd.f32 %v291_v7, %v273_v60  ;;  %v325_v16 = vadd.f32 %v324_v59, %v322_v8  ;;  %v352_v20 = vmul.f32 %v351_v18, %v596_v0  ;;  %v354_v21 = vstv %s841_s1 }
  0x60   :  { %v310_v19 = vmul.f32 %v309_v57, %v308_v11  ;;  %v358_v22 = vstv %s843_s28  ;;  %v341_v24 = vadd.f32 %v340_v13, %v337_v17  ;;  %v355_v25 = vmul.f32 %v601_v1, %v354_v21 }
  0x61   :  { %v327_v23 = vmax.f32 %v325_v16, 0.0  ;;  %v359_v26 = vmul.f32 %v610_v2, %v358_v22  ;;  %v347_v31 = vstv %s854_s29  ;;  %v362_v32 = vstv %s856_s30 }
  0x62   :  { %v311_v27 = vadd.f32 %v310_v19, %v292_v15  ;;  %v344_v29 = vadd.f32 %v343_v14, %v341_v24  ;;  %v356_v30 = vadd.f32 %v355_v25, %v352_v20  ;;  %v366_v37 = vstv %s471_s6 }
  0x63   :  { %v329_v28 = vmul.f32 %v328_v12, %v327_v23  ;;  %v370_v1 = vstv %s890_s4 }
  0x64   :  { %v346_v34 = vmax.f32 %v344_v29, 0.0  ;;  %v360_v35 = vadd.f32 %v359_v26, %v356_v30 }
  0x65   :  { %v330_v33 = vadd.f32 %v329_v28, %v311_v27 }
  0x66   :  { %v348_v36 = vmul.f32 %v347_v31, %v346_v34  ;;  %v363_v0 = vadd.f32 %v362_v32, %v360_v35 }
  0x68   :  { %v349_v38 = vadd.f32 %v348_v36, %v330_v33  ;;  %v365_v39 = vmax.f32 %v363_v0, 0.0 }
  0x6a   :  { %v367_v40 = vmul.f32 %v366_v37, %v365_v39 }
  0x6c   :  { %v368_v2 = vadd.f32 %v367_v40, %v349_v38 }
  0x6e   :  { %v371_v41 = vadd.f32 %v370_v1, %v368_v2 }
  0x70   :  { %v372_v42 = vmul.f32 0.5, %v371_v41 }
  0x72   :  { %478 = vtanh.f32 %v372_v42 }
  0x7c   :  { %v479_v43 = vpop.eup %478 }
  0x7d   :  { %v374_v44 = vmul.f32 0.5, %v479_v43 }
  0x7f   :  { %v375_v45 = vadd.f32 0.5, %v374_v44 }
  0x81   :  { %376 = vst [vmem:[#allocation9] sm:$0x1] %v375_v45 }
  0x82   :  { %527 = shalt.err (!%p524_p5)
}
  0x83   :  { %s528_s13 = scalar_lea.hbm %s891_s5, 16 }
  0x84   :  { %p529_p6 = scmp.ne.s32.totalorder %s891_s5, %s528_s13  ;;  %p532_p7 = scmp.lt.u32.totalorder %s528_s13, %s891_s5 }
  0x86   :  { %p534_p8 = pnand %p532_p7, %p529_p6 }
  0x88   :  { %537 = shalt.err (!%p534_p8)
}
  0x89   :  { %386 = dma.vmem_to_hbm [thread:$0]  %s384_s10, 16, %s891_s5, [#allocation4]  }
  0x8a   :  { %542 = dma.done.wait [#allocation4], 16  }
  0x8b   :  { %543 = vsyncadd [#allocation4], 4294967280 }
  0x8c   :  { %390 = vsyncpa [#allocation4], 1 }
  0x8d   :  { %391 = vsyncpa [#allocation5], 1 }
  0x8e   :  { %392 = vsyncpa [#allocation7], 1 }

</bundles_post_ra>
